<compile_context>
chip_gen: v7x
topology: tpu7x:2x2x1
jax: 0.10.0
libtpu: 0.0.40
codegen_flags: <defaults>
</compile_context>

<pallas_src>
import math

import jax
import jax.numpy as jnp
from jax.experimental import pallas as pl
from jax.experimental.pallas import tpu as pltpu


# ----------------------------------------------------------------------------
# Kernel 1: hoisted gated conditional projection
#   cqkv_gated = attention_gate * (condition @ w_cond_r + b_cond_r)
# w_cond_r / b_cond_r columns are pre-permuted to head-major [h | (q,k,v) | d]
# order so the result reshapes for free into per-head (1, 3*Dh) rows.
# ----------------------------------------------------------------------------
def cond_proj_kernel(gate_ref, cond_ref, w_ref, b_ref, o_ref):
    c = jnp.dot(cond_ref[...], w_ref[...],
                preferred_element_type=jnp.float32) + b_ref[...]
    o_ref[...] = gate_ref[...] * c                       # (B,1) * (B,3E)


# ----------------------------------------------------------------------------
# Kernel 2: fused per-(batch, head) QKV projection + conditional add +
#           causal attention + c_proj reduction over heads.
# grid = (B, H); head axis is a reduction axis: each step adds its head's
# c_proj contribution into a (T, E) f32 VMEM accumulator, last head writes out.
# ----------------------------------------------------------------------------
def fused_attn_kernel(x_ref, cgate_ref, wqkv_ref, bqkv_ref, wproj_ref,
                      bproj_ref, o_ref, k_ref, v_ref, acc_ref):
    h = pl.program_id(1)
    last_h = pl.num_programs(1) - 1

    x = x_ref[0]                          # (T, E)    bf16
    w = wqkv_ref[0]                       # (E, 3*Dh) bf16

    # Per-head QKV projection (MXU, f32 accumulation), then f32 bias + gated cond.
    qkv = jnp.dot(x, w, preferred_element_type=jnp.float32)
    qkv = qkv + bqkv_ref[0] + cgate_ref[0, 0]            # (T,3Dh) + (1,3Dh) x2

    T, three_dh = qkv.shape
    Dh = three_dh // 3
    q = qkv[:, :Dh]
    k = qkv[:, Dh:2 * Dh]
    v = qkv[:, 2 * Dh:]

    # present (k/v cache) emitted directly in (B, H, T, Dh) layout.
    k_ref[0, 0] = k.astype(k_ref.dtype)
    v_ref[0, 0] = v.astype(v_ref.dtype)

    # Causal softmax(q k^T / sqrt(Dh)) v — bf16 into MXU, f32 on the VPU.
    scale = 1.0 / math.sqrt(Dh)
    qs = (q * scale).astype(jnp.bfloat16)
    s = jnp.dot(qs, k.astype(jnp.bfloat16).T,
                preferred_element_type=jnp.float32)      # (T, T)
    row = jax.lax.broadcasted_iota(jnp.int32, (T, T), 0)
    col = jax.lax.broadcasted_iota(jnp.int32, (T, T), 1)
    s = jnp.where(row >= col, s, jnp.finfo(jnp.float32).min)

    m = jnp.max(s, axis=-1, keepdims=True)
    p = jnp.exp(s - m)
    l = jnp.sum(p, axis=-1, keepdims=True)
    p = p * pl.reciprocal(l, approx=True)                # EUP, frees VALU slots

    o_h = jnp.dot(p.astype(jnp.bfloat16), v.astype(jnp.bfloat16),
                  preferred_element_type=jnp.float32)    # (T, Dh)

    # Fused c_proj: this head's contribution to the (T, E) output.
    contrib = jnp.dot(o_h.astype(jnp.bfloat16), wproj_ref[0],
                      preferred_element_type=jnp.float32)  # (T, E)

    @pl.when(h == 0)
    def _():
        acc_ref[...] = jnp.zeros_like(acc_ref)

    acc_ref[...] += contrib

    @pl.when(h == last_h)
    def _():
        o_ref[0] = (acc_ref[...] + bproj_ref[...]).astype(o_ref.dtype)


# ----------------------------------------------------------------------------
# One-time weight layout transforms (host side, amortized in a real model).
# ----------------------------------------------------------------------------
def _reorder_qkv_weight(w, H, Dh):
    # (E, 3E) -> (H, E, 3*Dh): per-head column blocks [q_h | k_h | v_h]
    E = w.shape[0]
    return w.reshape(E, 3, H, Dh).transpose(2, 0, 1, 3).reshape(H, E, 3 * Dh)


def _reorder_qkv_bias(b, H, Dh):
    # (1, 3E) -> (H, 1, 3*Dh)
    return b.reshape(3, H, Dh).transpose(1, 0, 2).reshape(H, 1, 3 * Dh)


def _headmajor_columns(w, H, Dh):
    # (R, 3E) -> (R, 3E) with columns permuted to head-major [h, (q,k,v), d]
    r = w.shape[0]
    return w.reshape(r, 3, H, Dh).transpose(0, 2, 1, 3).reshape(r, 3 * H * Dh)


# ----------------------------------------------------------------------------
# Wrapper
# ----------------------------------------------------------------------------
def gpt2_conditional_attention(hidden_states, condition_states, attention_gate,
                               params, num_heads):
    B, T, E = hidden_states.shape
    H = num_heads
    Dh = E // H

    # Weight preprocessing: head-major layouts, bf16 MXU operands, f32 biases.
    w_qkv_r = _reorder_qkv_weight(params["w_attn"], H, Dh).astype(jnp.bfloat16)
    b_qkv_r = _reorder_qkv_bias(params["b_attn"], H, Dh).astype(jnp.float32)
    w_cond_r = _headmajor_columns(params["w_cond"], H, Dh).astype(jnp.bfloat16)
    b_cond_r = _headmajor_columns(params["b_cond"], H, Dh).astype(jnp.float32)
    w_proj_r = params["w_proj"].reshape(H, Dh, E).astype(jnp.bfloat16)  # free reshape
    b_proj = params["b_proj"].astype(jnp.float32)

    x_bf16 = hidden_states.astype(jnp.bfloat16)
    cond2d = condition_states.reshape(B, E).astype(jnp.bfloat16)
    gate = attention_gate.reshape(B, 1).astype(jnp.float32)

    # --- hoisted gated conditional projection (one small matmul for all batches)
    cgate = pl.pallas_call(
        cond_proj_kernel,
        out_shape=jax.ShapeDtypeStruct((B, 3 * E), jnp.float32),
        grid=(1,),
        in_specs=[
            pl.BlockSpec((B, 1), lambda i: (0, 0)),          # gate
            pl.BlockSpec((B, E), lambda i: (0, 0)),          # condition
            pl.BlockSpec((E, 3 * E), lambda i: (0, 0)),      # W c_cond (head-major)
            pl.BlockSpec((1, 3 * E), lambda i: (0, 0)),      # b c_cond (head-major)
        ],
        out_specs=pl.BlockSpec((B, 3 * E), lambda i: (0, 0)),
        compiler_params=pltpu.CompilerParams(dimension_semantics=("arbitrary",)),
    )(gate, cond2d, w_cond_r, b_cond_r)
    cgate = cgate.reshape(B, H, 1, 3 * Dh)   # free reshape (columns already head-major)

    cost = pl.CostEstimate(
        flops=2 * B * T * E * 3 * E + 4 * B * H * T * T * Dh + 2 * B * T * E * E,
        transcendentals=B * H * T * T,
        bytes_accessed=(B * T * E * 2 + 3 * E * E * 2 + E * E * 2
                        + B * H * 3 * Dh * 4 + 3 * E * 4 + E * 4
                        + B * T * E * 4 + 2 * B * H * T * Dh * 4),
    )

    # --- fused QKV + conditional add + causal attention + c_proj
    out, k_heads, v_heads = pl.pallas_call(
        fused_attn_kernel,
        out_shape=(
            jax.ShapeDtypeStruct((B, T, E), jnp.float32),
            jax.ShapeDtypeStruct((B, H, T, Dh), jnp.float32),
            jax.ShapeDtypeStruct((B, H, T, Dh), jnp.float32),
        ),
        grid=(B, H),
        in_specs=[
            pl.BlockSpec((1, T, E), lambda b, h: (b, 0, 0)),            # x (resident over h)
            pl.BlockSpec((1, 1, 1, 3 * Dh), lambda b, h: (b, h, 0, 0)),  # gate*cond per head
            pl.BlockSpec((1, E, 3 * Dh), lambda b, h: (h, 0, 0)),        # W qkv, head h
            pl.BlockSpec((1, 1, 3 * Dh), lambda b, h: (h, 0, 0)),        # b qkv, head h
            pl.BlockSpec((1, Dh, E), lambda b, h: (h, 0, 0)),            # W proj rows, head h
            pl.BlockSpec((1, E), lambda b, h: (0, 0)),                   # b proj
        ],
        out_specs=(
            pl.BlockSpec((1, T, E), lambda b, h: (b, 0, 0)),             # resident over h
            pl.BlockSpec((1, 1, T, Dh), lambda b, h: (b, h, 0, 0)),      # present k
            pl.BlockSpec((1, 1, T, Dh), lambda b, h: (b, h, 0, 0)),      # present v
        ),
        scratch_shapes=[pltpu.VMEM((T, E), jnp.float32)],
        compiler_params=pltpu.CompilerParams(
            dimension_semantics=("parallel", "arbitrary"),
            vmem_limit_bytes=64 * 1024 * 1024),   # re-derive tile sizes for v7x at real T
        cost_estimate=cost,
    )(x_bf16, cgate, w_qkv_r, b_qkv_r, w_proj_r, b_proj)

    present = (k_heads, v_heads)    # (B, H, T, Dh) — matches the PyTorch layout
    return out, present


# ----------------------------------------------------------------------------
# Pure-JAX f32 reference (mirrors the PyTorch forward, eval mode)
# ----------------------------------------------------------------------------
def reference(hidden, cond, gate, params, H):
    B, T, E = hidden.shape
    Dh = E // H
    qkv = hidden @ params["w_attn"] + params["b_attn"]
    cqkv = cond @ params["w_cond"] + params["b_cond"]           # (B, 1, 3E)
    qkv = qkv + gate * cqkv                                     # gate (B,1,1)
    q, k, v = jnp.split(qkv, 3, axis=-1)

    def heads(x):
        return x.reshape(B, T, H, Dh).transpose(0, 2, 1, 3)

    q, k, v = heads(q), heads(k), heads(v)
    s = jnp.einsum("bhqd,bhkd->bhqk", q, k) * (1.0 / math.sqrt(Dh))
    mask = jnp.tril(jnp.ones((T, T), bool))
    s = jnp.where(mask, s, jnp.finfo(jnp.float32).min)
    p = jax.nn.softmax(s, axis=-1)
    o = jnp.einsum("bhqk,bhkd->bhqd", p, v)
    merged = o.transpose(0, 2, 1, 3).reshape(B, T, E)
    return merged @ params["w_proj"] + params["b_proj"], k, v


def _rel_err(a, b):
    return jnp.linalg.norm(a - b) / (jnp.linalg.norm(b) + 1e-30)


if __name__ == "__main__":
    # small config: hidden_size=32, num_heads=4, seq=8, batch=2
    B, T, E, H = 2, 8, 32, 4

    key = jax.random.PRNGKey(0)
    k0, k1, k2, k3, k4, k5 = jax.random.split(key, 6)

    params = {
        "w_attn": 0.02 * jax.random.normal(k0, (E, 3 * E), jnp.float32),
        "b_attn": jnp.zeros((1, 3 * E), jnp.float32),
        "w_cond": 0.02 * jax.random.normal(k1, (E, 3 * E), jnp.float32),
        "b_cond": jnp.zeros((1, 3 * E), jnp.float32),
        "w_proj": 0.02 * jax.random.normal(k2, (E, E), jnp.float32),
        "b_proj": jnp.zeros((1, E), jnp.float32),
    }

    hidden_states = jax.random.normal(k3, (B, T, E), jnp.float32)
    condition_states = jax.random.normal(k4, (B, 1, E), jnp.float32)
    attention_gate = jax.random.uniform(k5, (B, 1, 1), jnp.float32)

    out, (k_heads, v_heads) = gpt2_conditional_attention(
        hidden_states, condition_states, attention_gate, params, H)
    out = jax.block_until_ready(out)

    ref_out, ref_k, ref_v = reference(
        hidden_states, condition_states, attention_gate, params, H)

    assert out.shape == (B, T, E)
    assert k_heads.shape == (B, H, T, E // H)
    assert v_heads.shape == (B, H, T, E // H)
    # bf16 MXU operands with f32 accumulation -> compare via relative L2 error.
    assert float(_rel_err(out, ref_out)) < 2e-2, "output mismatch vs reference"
    assert float(_rel_err(k_heads, ref_k)) < 2e-2, "key-cache mismatch vs reference"
    assert float(_rel_err(v_heads, ref_v)) < 2e-2, "value-cache mismatch vs reference"

    print("KERNEL_OK")
</pallas_src>

<mosaic_0001>
module attributes {stable_mosaic.version = 11 : i64} {
  func.func @cond_proj_kernel(%arg0: i32, %arg1: memref<2x1xf32, #tpu.memory_space<vmem>>, %arg2: memref<2x32xbf16, #tpu.memory_space<vmem>>, %arg3: memref<32x96xbf16, #tpu.memory_space<vmem>>, %arg4: memref<1x96xf32, #tpu.memory_space<vmem>>, %arg5: memref<2x96xf32, #tpu.memory_space<vmem>>) attributes {dimension_semantics = [#tpu.dimension_semantics<arbitrary>], iteration_bounds = array<i64: 1>, scalar_prefetch = 0 : i64, scratch_operands = 0 : i64, tpu.core_type = #tpu.core_type<tc>, window_params = [{pipeline_mode = #tpu.pipeline_mode<synchronous>, transform_indices = @transform_0, window_bounds = array<i64: 2, 1>}, {pipeline_mode = #tpu.pipeline_mode<synchronous>, transform_indices = @transform_1, window_bounds = array<i64: 2, 32>}, {pipeline_mode = #tpu.pipeline_mode<synchronous>, transform_indices = @transform_2, window_bounds = array<i64: 32, 96>}, {pipeline_mode = #tpu.pipeline_mode<synchronous>, transform_indices = @transform_3, window_bounds = array<i64: 1, 96>}, {pipeline_mode = #tpu.pipeline_mode<synchronous>, transform_indices = @transform_4, window_bounds = array<i64: 2, 96>}]} {
    %c0 = arith.constant 0 : index
    %c0_0 = arith.constant 0 : index
    %0 = vector.load %arg2[%c0, %c0_0] : memref<2x32xbf16, #tpu.memory_space<vmem>>, vector<2x32xbf16>
    %c0_1 = arith.constant 0 : index
    %c0_2 = arith.constant 0 : index
    %1 = vector.load %arg3[%c0_1, %c0_2] : memref<32x96xbf16, #tpu.memory_space<vmem>>, vector<32x96xbf16>
    %cst = arith.constant dense<0.000000e+00> : vector<2x96xf32>
    %2 = tpu.matmul %0, %1, %cst {dimension_numbers = #tpu.dot_dimension_numbers<[1], [0], [0], [1], [0, 0, 1, 1], [], []>} : vector<2x32xbf16>, vector<32x96xbf16>, vector<2x96xf32> -> vector<2x96xf32>
    %c0_3 = arith.constant 0 : index
    %c0_4 = arith.constant 0 : index
    %3 = vector.load %arg4[%c0_3, %c0_4] : memref<1x96xf32, #tpu.memory_space<vmem>>, vector<1x96xf32>
    %4 = vector.broadcast %3 : vector<1x96xf32> to vector<2x96xf32>
    %5 = arith.addf %2, %4 : vector<2x96xf32>
    %c0_5 = arith.constant 0 : index
    %c0_6 = arith.constant 0 : index
    %6 = vector.load %arg1[%c0_5, %c0_6] : memref<2x1xf32, #tpu.memory_space<vmem>>, vector<2x1xf32>
    %7 = vector.broadcast %6 : vector<2x1xf32> to vector<2x96xf32>
    %8 = arith.mulf %7, %5 : vector<2x96xf32>
    %c0_7 = arith.constant 0 : index
    %c0_8 = arith.constant 0 : index
    %9 = vector.load %arg5[%c0_7, %c0_8] : memref<2x96xf32, #tpu.memory_space<vmem>>, vector<2x96xf32>
    tpu.vector_store %arg5[%c0_7, %c0_8], %8 {strides = array<i32>} : memref<2x96xf32, #tpu.memory_space<vmem>>, vector<2x96xf32>,
    return
  }
  func.func @transform_0(%arg0: i32) -> (i32, i32) {
    %c0_i32 = arith.constant 0 : i32
    %c0_i32_0 = arith.constant 0 : i32
    %c0_i32_1 = arith.constant 0 : i32
    return %c0_i32, %c0_i32_0 : i32, i32
  }
  func.func @transform_1(%arg0: i32) -> (i32, i32) {
    %c0_i32 = arith.constant 0 : i32
    %c0_i32_0 = arith.constant 0 : i32
    %c0_i32_1 = arith.constant 0 : i32
    return %c0_i32, %c0_i32_0 : i32, i32
  }
  func.func @transform_2(%arg0: i32) -> (i32, i32) {
    %c0_i32 = arith.constant 0 : i32
    %c0_i32_0 = arith.constant 0 : i32
    %c0_i32_1 = arith.constant 0 : i32
    return %c0_i32, %c0_i32_0 : i32, i32
  }
  func.func @transform_3(%arg0: i32) -> (i32, i32) {
    %c0_i32 = arith.constant 0 : i32
    %c0_i32_0 = arith.constant 0 : i32
    %c0_i32_1 = arith.constant 0 : i32
    return %c0_i32, %c0_i32_0 : i32, i32
  }
  func.func @transform_4(%arg0: i32) -> (i32, i32) {
    %c0_i32 = arith.constant 0 : i32
    %c0_i32_0 = arith.constant 0 : i32
    %c0_i32_1 = arith.constant 0 : i32
    return %c0_i32, %c0_i32_0 : i32, i32
  }
}

</mosaic_0001>

<bundles_post_ra>
// kernel: tpu_custom_call.1
= control target key start
LH: loop header
LB: loop body
LE: loop exit
PB: predicated region body
PF: predicated region fallthrough
CT: control target
= control target key end

     0   :  { %9 = vsyncpa [#allocation3], 0  ;;  %s263_s0 = inlined_call_operand.vmem [shape: f32[2,1], index: 0, kind: input, shape index: {}]   ;;  %s264_s1 = inlined_call_operand.vmem [shape: bf16[2,32], index: 1, kind: input, shape index: {}]   ;;  %s265_s2 = inlined_call_operand.hbm [shape: bf16[32,96], index: 2, kind: input, shape index: {}]   ;;  %s266_s3 = inlined_call_operand.vmem [shape: f32[1,96], index: 3, kind: input, shape index: {}]   ;;  %s267_s4 = inlined_call_operand.hbm [shape: f32[2,96], index: 4, kind: output, shape index: {}]  }
   0x1   :  { %10 = vsyncpa [#allocation4], 0  ;;  %s198_s15 = smov [#allocation2]   ;;  %s150_s19 = scalar_lea.hbm %s265_s2, 256 }
   0x2   :  { %s20_s16 = sshll.u32 %s198_s15, 4  ;;  %p151_p0 = scmp.ne.s32.totalorder %s265_s2, %s150_s19  ;;  %s21_s16 = int_to_ptr.vmem [resolvable:$true] %s20_s16 }
   0x3   :  { %p154_p1 = scmp.lt.u32.totalorder %s150_s19, %s265_s2 }
   0x5   :  { %p156_p2 = pnand %p154_p1, %p151_p0 }
   0x7   :  { %159 = shalt.err (!%p156_p2)
}
   0x8   :  { %s160_s24 = scalar_lea.vmem %s21_s16, 256  ;;  %p165_p4 = scmp.lt.s32.totalorder %s21_s16, %s21_s16 }
   0x9   :  { %p161_p3 = scmp.ne.s32.totalorder %s21_s16, %s160_s24  ;;  %p166_p5 = scmp.lt.s32.totalorder %s160_s24, %s160_s24 }
   0xb   :  { %p167_p6 = por %p166_p5, %p165_p4 }
   0xd   :  { %p168_p7 = pnand %p167_p6, %p161_p3 }
   0xf   :  { %171 = shalt.err (!%p168_p7)
}
  0x10   :  { %s199_s25 = smov 64   ;;  %s200_s26 = smov 4  }
  0x11   :  { %26 = dma.hbm_to_vmem [thread:$0]  %s265_s2, 256, %s21_s16, [#allocation3], %s199_s25, %s199_s25, %s200_s26  }
  0x12   :  { %194 = dma.done.wait [#allocation3], 256  }
  0x13   :  { %195 = vsyncadd [#allocation3], 4294967040  ;;  %v201_v0 = vmov 0.0   ;;  %vm202_vm0 = vmmov 0   ;;  %v203_v1 = vmov 0   ;;  %v148_v2 = vld [vmem:[#allocation2] sm:$0xff]  }
  0x14   :  { %132 = vmatprep.subr.bf16.mxu0 %v201_v0  ;;  %136 = vmatprep.mubr.msk.bf16.mxu0 %vm202_vm0, %v201_v0  ;;  %v149_v3 = vld [vmem:[#allocation2 + $0x8] sm:$0xff]   ;;  %vm57_vm1 = vcmask 261120   ;;  %s204_s8 = smov [#allocation5]   ;;  %vm108_vm2 = vcmask 779264  }
  0x15   :  { %147 = vset.pattern.permute.xlu0 %v203_v1  ;;  %133 = vmatpush3.bf16.msra.mxu0 %v148_v2  ;;  %v101_v4 = vld [vmem:[%s263_s0] sm:$0x3]  ;;  %s116_s9 = sshll.u32 %s204_s8, 4  ;;  %s117_s9 = int_to_ptr.vmem [resolvable:$true] %s116_s9 }
  0x16   :  { %134 = vmatprep.subr.bf16.mxu0 %v201_v0  ;;  %104 = vperm.xlu0 %147, %v101_v4   ;;  %v33_v5 = vld [vmem:[%s264_s1] sm:$0x1]  ;;  %s172_s0 = scalar_lea.vmem %s117_s9, 32  ;;  %p177_p9 = scmp.lt.s32.totalorder %s117_s9, %s117_s9 }
  0x17   :  { %v125_v6 = vld [vmem:[%s266_s3] ss:$0 sm:$0xff]  ;;  %p173_p8 = scmp.ne.s32.totalorder %s117_s9, %s172_s0  ;;  %p178_p10 = scmp.lt.s32.totalorder %s172_s0, %s172_s0 }
  0x19   :  { %135 = vmatpush3.bf16.msra.mxu0 %v149_v3  ;;  %p179_p11 = por %p178_p10, %p177_p9 }
  0x1b   :  { %p180_p12 = pnand %p179_p11, %p173_p8 }
  0x1c   :  { %137 = vmatmul.mubr.msk.bf16.vlgmr.msra.gmra.mrb[0].mxu0 %vm57_vm1, %v33_v5 }
  0x95   :  { %v105_v8 = vpop.permute.xlu0 %104 }
  0xef   :  { %v95_v7 = vpop.f32.mrb[0].mxu0 }
  0xf0   :  { %v96_v9 = vadd.f32 %v125_v6, %v95_v7  ;;  %v138_v10 = vpop.f32.mrb[1].mxu0 }
  0xf1   :  { %v98_v11 = vpop.f32.mrb[2].mxu0 }
  0xf2   :  { %v107_v12 = vmul.f32 %v105_v8, %v96_v9  ;;  %v139_v13 = vpop.f32.mrb[3].mxu0 }
  0xf4   :  { %109 = vst.msk [vmem:[#allocation5] sm:$0x3] %vm108_vm2, %v107_v12 }
  0xf5   :  { %183 = shalt.err (!%p180_p12)
}
  0xf6   :  { %s184_s10 = scalar_lea.hbm %s267_s4, 32 }
  0xf7   :  { %p185_p13 = scmp.ne.s32.totalorder %s267_s4, %s184_s10  ;;  %p188_p0 = scmp.lt.u32.totalorder %s184_s10, %s267_s4 }
  0xf9   :  { %p190_p1 = pnand %p188_p0, %p185_p13 }
  0xfb   :  { %193 = shalt.err (!%p190_p1)
}
  0xfc   :  { %119 = dma.vmem_to_hbm [thread:$0]  %s117_s9, 32, %s267_s4, [#allocation4]  }
  0xfd   :  { %196 = dma.done.wait [#allocation4], 32  }
  0xfe   :  { %197 = vsyncadd [#allocation4], 4294967264 }
  0xff   :  { %123 = vsyncpa [#allocation3], 1 }
 0x100   :  { %124 = vsyncpa [#allocation4], 1 }

</bundles_post_ra>
